<compile_context>
chip_gen: v5e
topology: v5e:2x2
jax: 0.10.0
libtpu: 0.0.40
codegen_flags: <defaults>
</compile_context>

<pallas_src>
import math

import jax
import jax.numpy as jnp
from jax.experimental import pallas as pl
from jax.experimental.pallas import tpu as pltpu


BN_EPS = 1e-5
LANE = 128


def _round_up(x, m):
    return ((x + m - 1) // m) * m


def dnn2l_kernel(x_ref, w1_ref, b1_ref, w2_ref, b2_ref, out_ref):
    # fc1: Linear -> ReLU   (BN already folded into w2/b2 by the wrapper)
    h = jnp.dot(x_ref[...], w1_ref[...],
                preferred_element_type=jnp.float32)          # [TB, H] f32
    h = jnp.maximum(h + b1_ref[...], 0.0)                    # bias + ReLU (one pass)
    # fc2 (+ folded BN): Linear to a lane-dense, 128-padded output slab.
    h = h.astype(w2_ref.dtype)
    out = jnp.dot(h, w2_ref[...],
                  preferred_element_type=jnp.float32)        # [TB, O_pad] f32
    out_ref[...] = (out + b2_ref[...]).astype(out_ref.dtype)


def dnn_2l_forward(x, params, *, tile_b=512, compute_dtype=jnp.float32):
    """x: [B, D]; params: dict of weights (see init_params). Returns [B, O] f32.

    compute_dtype=jnp.bfloat16 halves HBM/VMEM traffic and doubles MXU rate on
    v6e/v7x for non-trivial sizes; f32 accumulation is always requested.
    """
    B, D = x.shape
    H = params["w1"].shape[1]
    O = params["w2"].shape[1]

    # --- Fold eval-mode BatchNorm into fc2 (exact: BN is affine after ReLU). ---
    scale = params["bn_gamma"] * jax.lax.rsqrt(params["bn_var"] + BN_EPS)   # [1, H]
    shift = params["bn_beta"] - params["bn_mean"] * scale                   # [1, H]
    w2f = scale.reshape(H, 1) * params["w2"]                                # [H, O]
    b2f = params["b2"] + shift @ params["w2"]                               # [1, O]

    # --- Pad output features to a full 128-lane slab (lane-dense stores). ---
    O_pad = _round_up(max(O, LANE), LANE)
    w2p = jnp.zeros((H, O_pad), jnp.float32).at[:, :O].set(w2f)
    b2p = jnp.zeros((1, O_pad), jnp.float32).at[:, :O].set(b2f)

    # --- Batch tiling (grid is over the batch axis only; weights resident). ---
    tb = min(tile_b, _round_up(B, 8))
    B_pad = _round_up(B, tb)
    x_in = x if B_pad == B else jnp.pad(x, ((0, B_pad - B), (0, 0)))

    x_in = x_in.astype(compute_dtype)
    w1 = params["w1"].astype(compute_dtype)
    b1 = params["b1"].astype(jnp.float32)      # added to f32 accumulator
    w2p = w2p.astype(compute_dtype)
    b2p = b2p.astype(jnp.float32)

    # --- VMEM budget: residents + double-buffered x/out tiles + headroom. ---
    isz = jnp.dtype(compute_dtype).itemsize
    resident = (D * H + H * O_pad) * isz + (H + O_pad) * 4
    tiles = 2 * tb * D * isz + 2 * tb * O_pad * 4
    scratch = tb * H * 4                              # fp32 intermediate h
    vmem_bytes = int(min(128 * 1024 * 1024,
                         max(32 * 1024 * 1024, 2 * (resident + tiles + scratch))))

    grid = (B_pad // tb,)
    out_pad = pl.pallas_call(
        dnn2l_kernel,
        out_shape=jax.ShapeDtypeStruct((B_pad, O_pad), jnp.float32),
        grid=grid,
        in_specs=[
            pl.BlockSpec((tb, D), lambda i: (i, 0)),      # x tile, pipelined
            pl.BlockSpec((D, H), lambda i: (0, 0)),       # w1 resident
            pl.BlockSpec((1, H), lambda i: (0, 0)),       # b1 resident
            pl.BlockSpec((H, O_pad), lambda i: (0, 0)),   # w2 (BN-folded, padded)
            pl.BlockSpec((1, O_pad), lambda i: (0, 0)),   # b2 (BN-folded, padded)
        ],
        out_specs=pl.BlockSpec((tb, O_pad), lambda i: (i, 0)),
        compiler_params=pltpu.CompilerParams(
            dimension_semantics=("parallel",),
            vmem_limit_bytes=vmem_bytes,
        ),
    )(x_in, w1, b1, w2p, b2p)

    return out_pad[:B, :O]


def xavier_uniform(key, fan_in, fan_out):
    # torch.nn.init.xavier_uniform_ on a [out, in] weight; we store the transpose.
    bound = math.sqrt(6.0 / (fan_in + fan_out))
    return jax.random.uniform(key, (fan_in, fan_out), jnp.float32, -bound, bound)


def init_params(key, input_size, n_l1, output_size=1):
    k1, k2, k3, k4 = jax.random.split(key, 4)
    # nn.Linear default bias init: U(-1/sqrt(fan_in), 1/sqrt(fan_in))
    b1_bound = 1.0 / math.sqrt(input_size)
    b2_bound = 1.0 / math.sqrt(n_l1)
    return {
        "w1": xavier_uniform(k1, input_size, n_l1),                    # [D, H]
        "b1": jax.random.uniform(k2, (1, n_l1), jnp.float32,
                                 -b1_bound, b1_bound),                 # [1, H]
        "bn_gamma": jnp.ones((1, n_l1), jnp.float32),                  # BN weight = 1
        "bn_beta": jnp.zeros((1, n_l1), jnp.float32),                  # BN bias = 0
        "bn_mean": jnp.zeros((1, n_l1), jnp.float32),                  # running_mean
        "bn_var": jnp.ones((1, n_l1), jnp.float32),                    # running_var
        "w2": xavier_uniform(k3, n_l1, output_size),                   # [H, O]
        "b2": jax.random.uniform(k4, (1, output_size), jnp.float32,
                                 -b2_bound, b2_bound),                 # [1, O]
    }


def reference_forward(x, p):
    # Unfused eval-mode reference (Linear -> ReLU -> BN(running stats) -> Linear).
    h = jnp.maximum(x @ p["w1"] + p["b1"], 0.0)
    h = (h - p["bn_mean"]) * jax.lax.rsqrt(p["bn_var"] + BN_EPS) * p["bn_gamma"] + p["bn_beta"]
    return h @ p["w2"] + p["b2"]


if __name__ == "__main__":
    key = jax.random.PRNGKey(0)
    k_x, k_p = jax.random.split(key)

    B, D, H, O = 8, 32, 32, 1  # batch, input_size, n_l1, output_size
    x = jax.random.normal(k_x, (B, D), jnp.float32)
    params = init_params(k_p, D, H, O)

    out = dnn_2l_forward(x, params)
    out = jax.block_until_ready(out)

    ref = reference_forward(x, params)
    assert out.shape == (B, O)
    assert jnp.allclose(out, ref, atol=1e-5, rtol=1e-5)

    print("KERNEL_OK")
</pallas_src>

<mosaic_0001>
module attributes {stable_mosaic.version = 11 : i64} {
  func.func @dnn2l_kernel(%arg0: i32, %arg1: memref<8x32xf32, #tpu.memory_space<vmem>>, %arg2: memref<32x32xf32, #tpu.memory_space<vmem>>, %arg3: memref<1x32xf32, #tpu.memory_space<vmem>>, %arg4: memref<32x128xf32, #tpu.memory_space<vmem>>, %arg5: memref<1x128xf32, #tpu.memory_space<vmem>>, %arg6: memref<8x128xf32, #tpu.memory_space<vmem>>) attributes {dimension_semantics = [#tpu.dimension_semantics<parallel>], iteration_bounds = array<i64: 1>, scalar_prefetch = 0 : i64, scratch_operands = 0 : i64, tpu.core_type = #tpu.core_type<tc>, window_params = [{transform_indices = @transform_0, window_bounds = array<i64: 8, 32>}, {pipeline_mode = #tpu.pipeline_mode<synchronous>, transform_indices = @transform_1, window_bounds = array<i64: 32, 32>}, {pipeline_mode = #tpu.pipeline_mode<synchronous>, transform_indices = @transform_2, window_bounds = array<i64: 1, 32>}, {pipeline_mode = #tpu.pipeline_mode<synchronous>, transform_indices = @transform_3, window_bounds = array<i64: 32, 128>}, {pipeline_mode = #tpu.pipeline_mode<synchronous>, transform_indices = @transform_4, window_bounds = array<i64: 1, 128>}, {transform_indices = @transform_5, window_bounds = array<i64: 8, 128>}]} {
    %c0 = arith.constant 0 : index
    %c0_0 = arith.constant 0 : index
    %0 = vector.load %arg1[%c0, %c0_0] : memref<8x32xf32, #tpu.memory_space<vmem>>, vector<8x32xf32>
    %c0_1 = arith.constant 0 : index
    %c0_2 = arith.constant 0 : index
    %1 = vector.load %arg2[%c0_1, %c0_2] : memref<32x32xf32, #tpu.memory_space<vmem>>, vector<32x32xf32>
    %cst = arith.constant dense<0.000000e+00> : vector<8x32xf32>
    %2 = tpu.matmul %0, %1, %cst {dimension_numbers = #tpu.dot_dimension_numbers<[1], [0], [0], [1], [0, 0, 1, 1], [], []>} : vector<8x32xf32>, vector<32x32xf32>, vector<8x32xf32> -> vector<8x32xf32>
    %c0_3 = arith.constant 0 : index
    %c0_4 = arith.constant 0 : index
    %3 = vector.load %arg3[%c0_3, %c0_4] : memref<1x32xf32, #tpu.memory_space<vmem>>, vector<1x32xf32>
    %4 = vector.broadcast %3 : vector<1x32xf32> to vector<8x32xf32>
    %5 = arith.addf %2, %4 : vector<8x32xf32>
    %cst_5 = arith.constant 0.000000e+00 : f32
    %6 = vector.broadcast %cst_5 : f32 to vector<8x32xf32>
    %7 = arith.maximumf %5, %6 : vector<8x32xf32>
    %c0_6 = arith.constant 0 : index
    %c0_7 = arith.constant 0 : index
    %8 = vector.load %arg4[%c0_6, %c0_7] : memref<32x128xf32, #tpu.memory_space<vmem>>, vector<32x128xf32>
    %cst_8 = arith.constant dense<0.000000e+00> : vector<8x128xf32>
    %9 = tpu.matmul %7, %8, %cst_8 {dimension_numbers = #tpu.dot_dimension_numbers<[1], [0], [0], [1], [0, 0, 1, 1], [], []>} : vector<8x32xf32>, vector<32x128xf32>, vector<8x128xf32> -> vector<8x128xf32>
    %c0_9 = arith.constant 0 : index
    %c0_10 = arith.constant 0 : index
    %10 = vector.load %arg5[%c0_9, %c0_10] : memref<1x128xf32, #tpu.memory_space<vmem>>, vector<1x128xf32>
    %11 = vector.broadcast %10 : vector<1x128xf32> to vector<8x128xf32>
    %12 = arith.addf %9, %11 : vector<8x128xf32>
    %c0_11 = arith.constant 0 : index
    %c0_12 = arith.constant 0 : index
    %13 = vector.load %arg6[%c0_11, %c0_12] : memref<8x128xf32, #tpu.memory_space<vmem>>, vector<8x128xf32>
    tpu.vector_store %arg6[%c0_11, %c0_12], %12 {strides = array<i32>} : memref<8x128xf32, #tpu.memory_space<vmem>>, vector<8x128xf32>,
    return
  }
  func.func @transform_0(%arg0: i32) -> (i32, i32) {
    %c0_i32 = arith.constant 0 : i32
    %c0_i32_0 = arith.constant 0 : i32
    return %arg0, %c0_i32 : i32, i32
  }
  func.func @transform_1(%arg0: i32) -> (i32, i32) {
    %c0_i32 = arith.constant 0 : i32
    %c0_i32_0 = arith.constant 0 : i32
    %c0_i32_1 = arith.constant 0 : i32
    return %c0_i32, %c0_i32_0 : i32, i32
  }
  func.func @transform_2(%arg0: i32) -> (i32, i32) {
    %c0_i32 = arith.constant 0 : i32
    %c0_i32_0 = arith.constant 0 : i32
    %c0_i32_1 = arith.constant 0 : i32
    return %c0_i32, %c0_i32_0 : i32, i32
  }
  func.func @transform_3(%arg0: i32) -> (i32, i32) {
    %c0_i32 = arith.constant 0 : i32
    %c0_i32_0 = arith.constant 0 : i32
    %c0_i32_1 = arith.constant 0 : i32
    return %c0_i32, %c0_i32_0 : i32, i32
  }
  func.func @transform_4(%arg0: i32) -> (i32, i32) {
    %c0_i32 = arith.constant 0 : i32
    %c0_i32_0 = arith.constant 0 : i32
    %c0_i32_1 = arith.constant 0 : i32
    return %c0_i32, %c0_i32_0 : i32, i32
  }
  func.func @transform_5(%arg0: i32) -> (i32, i32) {
    %c0_i32 = arith.constant 0 : i32
    %c0_i32_0 = arith.constant 0 : i32
    return %arg0, %c0_i32 : i32, i32
  }
}

</mosaic_0001>

<bundles_post_ra>
// kernel: tpu_custom_call.1
= control target key start
LH: loop header
LB: loop body
LE: loop exit
PB: predicated region body
PF: predicated region fallthrough
CT: control target
= control target key end

     0   :  { %10 = vsyncpa [#allocation3], 0  ;;  %s316_s0 = inlined_call_operand.hbm [shape: f32[8,32], index: 0, kind: input, shape index: {}]   ;;  %s317_s1 = inlined_call_operand.hbm [shape: f32[32,32], index: 1, kind: input, shape index: {}]   ;;  %s318_s2 = inlined_call_operand.vmem [shape: f32[1,32], index: 2, kind: input, shape index: {}]   ;;  %s319_s3 = inlined_call_operand.hbm [shape: f32[32,128], index: 3, kind: input, shape index: {}]   ;;  %s320_s4 = inlined_call_operand.vmem [shape: f32[1,128], index: 4, kind: input, shape index: {}]   ;;  %s321_s5 = inlined_call_operand.hbm [shape: f32[8,128], index: 5, kind: output, shape index: {}]  }
   0x1   :  { %11 = vsyncpa [#allocation6], 0  ;;  %s28_s20 = sshll.u32 %s317_s1, 4  ;;  %s29_s20 = int_to_ptr.hbm [resolvable:$true] %s28_s20 }
   0x2   :  { %12 = vsyncpa [#allocation4], 0  ;;  %s262_s21 = smov [#allocation5]   ;;  %s18_s25 = sshll.u32 %s316_s0, 4  ;;  %s19_s25 = int_to_ptr.hbm [resolvable:$true] %s18_s25 }
   0x3   :  { %s30_s22 = sshll.u32 %s262_s21, 4  ;;  %s263_s26 = smov 128   ;;  %s31_s22 = int_to_ptr.vmem [resolvable:$true] %s30_s22 }
   0x4   :  { %s264_s27 = smov 8   ;;  %s265_s28 = smov [#allocation2]  }
   0x5   :  { %36 = dma.hbm_to_vmem [thread:$0]  %s29_s20, 512, %s31_s22, [#allocation6], %s263_s26, %s263_s26, %s264_s27  }
   0x6   :  { %s20_s29 = sshll.u32 %s265_s28, 4  ;;  %s43_s7 = sshll.u32 %s319_s3, 4  ;;  %s21_s29 = int_to_ptr.vmem [resolvable:$true] %s20_s29  ;;  %s44_s7 = int_to_ptr.hbm [resolvable:$true] %s43_s7 }
   0x7   :  { %23 = dma.hbm_to_vmem [thread:$0]  %s19_s25, 128, %s21_s29, [#allocation3]  }
   0x8   :  { %s266_s1 = smov [#allocation7]  }
   0x9   :  { %s45_s8 = sshll.u32 %s266_s1, 4  ;;  %s46_s8 = int_to_ptr.vmem [resolvable:$true] %s45_s8 }
   0xa   :  { %51 = dma.hbm_to_vmem [thread:$0]  %s44_s7, 512, %s46_s8, [#allocation6], %s263_s26, %s263_s26, %s264_s27  }
   0xb   :  { %256 = dma.done.wait [#allocation3], 128  }
   0xc   :  { %257 = vsyncadd [#allocation3], 4294967168 }
   0xd   :  { %258 = dma.done.wait [#allocation6], 1024  }
   0xe   :  { %259 = vsyncadd [#allocation6], 4294966272  ;;  %v70_v0 = vld [vmem:[#allocation5 + $0x18] sm:$0xff]  ;;  %v69_v1 = vld [vmem:[#allocation5 + $0x10] sm:$0xff]  ;;  %vm75_vm0 = vcmask 261120   ;;  %s267_s11 = smov [#allocation8]  }
   0xf   :  { %91 = vmatpush.msra.mxu0 %v70_v0  ;;  %v103_v2 = vld [vmem:[#allocation7 + $0x18] sm:$0xff]  ;;  %v68_v3 = vld [vmem:[#allocation5 + $0x8] sm:$0xff]  ;;  %v67_v4 = vld [vmem:[#allocation5] sm:$0xff]  ;;  %s137_s12 = sshll.u32 %s267_s11, 4  ;;  %s139_s15 = sshll.u32 %s321_s5, 4  ;;  %s138_s12 = int_to_ptr.vmem [resolvable:$true] %s137_s12  ;;  %s140_s15 = int_to_ptr.hbm [resolvable:$true] %s139_s15 }
  0x10   :  { %123 = vmatpush.msra.mxu1 %v103_v2  ;;  %v66_v5 = vld [vmem:[#allocation2] sm:$0xff]  ;;  %v102_v6 = vld [vmem:[#allocation7 + $0x10] sm:$0xff]  ;;  %v101_v7 = vld [vmem:[#allocation7 + $0x8] sm:$0xff] }
  0x11   :  { %92 = vmatpush.msra.mxu0 %v69_v1  ;;  %v100_v8 = vld [vmem:[#allocation7] sm:$0xff]  ;;  %v158_v9 = vld [vmem:[%s318_s2] ss:$0 sm:$0xff] }
  0x12   :  { %124 = vmatpush.msra.mxu1 %v102_v6  ;;  %v159_v13 = vld [vmem:[%s320_s4] ss:$0 sm:$0xff] }
  0x13   :  { %93 = vmatpush.msra.mxu0 %v68_v3 }
  0x14   :  { %125 = vmatpush.msra.mxu1 %v101_v7 }
  0x15   :  { %94 = vmatpush.msra.mxu0 %v67_v4 }
  0x16   :  { %150 = vmatmul.msk.f32.vlgmr.msra.gmra.mxu0 %vm75_vm0, %v66_v5  ;;  %126 = vmatpush.msra.mxu1 %v100_v8 }
  0x93   :  { %v96_v10 = vpop.f32.mrf.mxu0 }
  0x94   :  { %v97_v11 = vadd.f32 %v158_v9, %v96_v10 }
  0x96   :  { %v99_v12 = vmax.f32 %v97_v11, 0.0 }
  0x98   :  { %151 = vmatmul.msk.f32.vlgmr.msra.gmra.mxu1 %vm75_vm0, %v99_v12 }
 0x115   :  { %v128_v14 = vpop.f32.mrf.mxu1 }
 0x116   :  { %v129_v15 = vadd.f32 %v159_v13, %v128_v14 }
 0x118   :  { %131 = vst [vmem:[#allocation8] sm:$0xff] %v129_v15 }
 0x119   :  { %142 = dma.vmem_to_hbm [thread:$0]  %s138_s12, 128, %s140_s15, [#allocation4]  }
 0x11a   :  { %260 = dma.done.wait [#allocation4], 128  }
 0x11b   :  { %261 = vsyncadd [#allocation4], 4294967168 }
 0x11c   :  { %147 = vsyncpa [#allocation3], 1 }
 0x11d   :  { %148 = vsyncpa [#allocation6], 1 }
 0x11e   :  { %149 = vsyncpa [#allocation4], 1 }

</bundles_post_ra>
